<compile_context>
chip_gen: v5e
topology: v5e:2x2
jax: 0.10.0
libtpu: 0.0.40
codegen_flags: <defaults>
</compile_context>

<pallas_src>
import math

import jax
import jax.numpy as jnp
from jax.experimental import pallas as pl
from jax.experimental.pallas import tpu as pltpu


def _embedding_kernel(frames_ref, w_ref, b_ref, out_ref):
    # One MXU pass per tile: (tm, 2*n_fft) @ (2*n_fft, C), f32 accumulate,
    # bias add, unmasked full-width (tm, C) store.
    out_ref[...] = (
        jnp.dot(frames_ref[...], w_ref[...], preferred_element_type=jnp.float32)
        + b_ref[...]
    )


def _pick_tile(nt, cap=512):
    """Largest row tile that divides nt, is <= cap, a multiple of 8 (sublane),
    and leaves >= 2 grid steps when possible (v7x has 2 TensorCores)."""
    for tm in range(min(cap, nt // 2), 7, -1):
        if nt % tm == 0 and tm % 8 == 0:
            return tm
    return nt  # single full-extent block is always layout-legal


class EmbeddingHybridPallas:
    def __init__(self, wave_length=1024, window_size=128, hop_size=64,
                 num_features=128, key=None):
        self.wave_length = wave_length
        self.window_size = window_size
        self.hop_size = hop_size
        self.stft_padding = hop_size // 2
        self.num_features = num_features
        self.n_fft = window_size
        self.T = wave_length // hop_size
        self.wave_padding = ((self.T - 1) * hop_size + window_size - wave_length + 1) // 2
        lout = (wave_length + 2 * self.wave_padding - (window_size - 1) - 1) // hop_size + 1
        assert lout == self.T

        C1 = num_features // 2
        C = num_features
        Fb = self.n_fft // 2

        # Deterministic parameter init (Conv1d-style uniform bounds).
        k1, k2, k3, k4 = jax.random.split(key, 4)
        bound1 = 1.0 / math.sqrt(window_size)      # conv1 fan_in = window_size * 1
        self.W1 = jax.random.uniform(k1, (C1, window_size), jnp.float32, -bound1, bound1)
        self.b1 = jax.random.uniform(k2, (C1,), jnp.float32, -bound1, bound1)
        bound2 = 1.0 / math.sqrt(1 * window_size)  # conv2 fan_in = 1 * window_size
        self.W2 = jax.random.uniform(k3, (C1, window_size), jnp.float32, -bound2, bound2)
        self.b2 = jax.random.uniform(k4, (C1,), jnp.float32, -bound2, bound2)
        # TODO(synk): self.layernorm / self.prelu exist in the torch module's __init__
        # but are never used in forward(), so they are intentionally omitted.

        # ---- fold hann * DFT * conv1 into one matrix, pack both branches into one ----
        hi = jax.lax.Precision.HIGHEST
        k = jnp.arange(self.n_fft, dtype=jnp.float32)
        self.hann = 0.5 * (1.0 - jnp.cos(2.0 * jnp.pi * k / self.n_fft))  # periodic hann
        freqs = jnp.arange(1, Fb + 1, dtype=jnp.float32)                  # bins 1..n_fft//2
        ang = 2.0 * jnp.pi * k[:, None] * freqs[None, :] / self.n_fft
        scale = 1.0 / math.sqrt(self.n_fft)                               # normalized=True
        cos_m = jnp.cos(ang) * scale                                      # (n_fft, Fb)
        sin_m = jnp.sin(ang) * scale
        w1r = self.W1[:, 0::2].T                                          # real cols (Fb, C1)
        w1i = self.W1[:, 1::2].T                                          # imag cols (Fb, C1)
        # z = (f1*hann)@cos@w1r - (f1*hann)@sin@w1i + b1  ==  f1 @ M1 + b1
        m1 = self.hann[:, None] * (jnp.dot(cos_m, w1r, precision=hi)
                                   - jnp.dot(sin_m, w1i, precision=hi))   # (n_fft, C1)
        # Block-diagonal pack: [M1 | 0 ; 0 | W2^T]  ->  (2*n_fft, C)
        w_packed = jnp.zeros((2 * self.n_fft, C), jnp.float32)
        w_packed = w_packed.at[: self.n_fft, :C1].set(m1)
        w_packed = w_packed.at[self.n_fft:, C1:].set(self.W2.T)
        self.w_packed = w_packed.astype(jnp.bfloat16)                     # MXU-friendly
        self.b_packed = jnp.concatenate([self.b1, self.b2])[None, :]      # (1, C) f32

    def __call__(self, x):
        N, L = x.shape
        assert L == self.wave_length
        T, n_fft, hop = self.T, self.n_fft, self.hop_size
        C = self.num_features

        # ---- glue: padding + framing only; all compute lives in the kernel ----
        # TODO(synk): for long waveforms, move framing into the kernel (padded wave via
        # memory_space=pl.ANY + pl.ds slicing) to avoid ~2x HBM duplication from the
        # 50%-overlapping frames; at this size the wrapper gather is noise.
        x1 = jnp.pad(x, ((0, 0), (self.stft_padding, self.stft_padding)))
        x1 = jnp.pad(x1, ((0, 0), (n_fft // 2, n_fft // 2)), mode="reflect")
        idx1 = (jnp.arange(1, T + 1) * hop)[:, None] + jnp.arange(n_fft)[None, :]
        frames1 = x1[:, idx1].reshape(N * T, n_fft)          # STFT frames 1..T
        x2 = jnp.pad(x, ((0, 0), (self.wave_padding, self.wave_padding)))
        idx2 = (jnp.arange(T) * hop)[:, None] + jnp.arange(self.window_size)[None, :]
        frames2 = x2[:, idx2].reshape(N * T, self.window_size)
        frames = jnp.concatenate([frames1, frames2], axis=-1).astype(jnp.bfloat16)

        NT = N * T
        K = 2 * n_fft
        tm = _pick_tile(NT)
        grid = (NT // tm,)

        flops = 2 * NT * K * C
        bytes_accessed = NT * K * 2 + K * C * 2 + C * 4 + NT * C * 4

        out_flat = pl.pallas_call(
            _embedding_kernel,
            out_shape=jax.ShapeDtypeStruct((NT, C), jnp.float32),
            grid_spec=pl.GridSpec(
                grid=grid,
                in_specs=[
                    pl.BlockSpec((tm, K), lambda i: (i, 0)),    # packed frames (bf16)
                    pl.BlockSpec((K, C), lambda i: (0, 0)),     # packed weights (bf16)
                    pl.BlockSpec((1, C), lambda i: (0, 0)),     # packed bias (f32)
                ],
                out_specs=pl.BlockSpec((tm, C), lambda i: (i, 0)),
            ),
            compiler_params=pltpu.CompilerParams(
                dimension_semantics=("parallel",)),
            cost_estimate=pl.CostEstimate(
                flops=flops, transcendentals=0, bytes_accessed=bytes_accessed),
        )(frames, self.w_packed, self.b_packed)

        # frames-major (N*T, C) -> PyTorch (N, C, T)
        return out_flat.reshape(N, T, C).transpose(0, 2, 1)


def reference_forward(x, mod):
    """Pure-JAX reference replicating the torch forward (uses jnp.fft.rfft)."""
    N, _ = x.shape
    n_fft, hop, T = mod.n_fft, mod.hop_size, mod.T
    hi = jax.lax.Precision.HIGHEST
    x1 = jnp.pad(x, ((0, 0), (mod.stft_padding, mod.stft_padding)))
    x1c = jnp.pad(x1, ((0, 0), (n_fft // 2, n_fft // 2)), mode="reflect")
    n_frames = 1 + x1.shape[1] // hop
    idx = (jnp.arange(n_frames) * hop)[:, None] + jnp.arange(n_fft)[None, :]
    fr = x1c[:, idx] * mod.hann[None, None, :]
    spec = jnp.fft.rfft(fr, axis=-1) / jnp.sqrt(jnp.float32(n_fft))
    spec = spec[:, 1:-1, 1:]                                  # drop edge frames + DC bin
    zr = jnp.transpose(jnp.real(spec), (0, 2, 1))             # (N, Fb, T)
    zi = jnp.transpose(jnp.imag(spec), (0, 2, 1))
    z = jnp.stack([zr, zi], axis=2).reshape(N, n_fft, T)      # permute+flatten
    zout = jnp.einsum("ck,nkt->nct", mod.W1, z, precision=hi) + mod.b1[None, :, None]
    x2p = jnp.pad(x, ((0, 0), (mod.wave_padding, mod.wave_padding)))
    idx2 = (jnp.arange(T) * hop)[:, None] + jnp.arange(mod.window_size)[None, :]
    fr2 = x2p[:, idx2]
    x2out = jnp.einsum("ck,ntk->nct", mod.W2, fr2, precision=hi) + mod.b2[None, :, None]
    return jnp.concatenate([zout, x2out], axis=1)


if __name__ == "__main__":
    # Small, self-consistent config (asserts Lout == T just like the module).
    wave_length, window_size, hop_size, num_features = 1024, 128, 64, 128
    N = 2

    root = jax.random.PRNGKey(0)
    k_params, k_x = jax.random.split(root)
    mod = EmbeddingHybridPallas(wave_length, window_size, hop_size, num_features,
                                key=k_params)
    x = jax.random.normal(k_x, (N, wave_length), dtype=jnp.float32)

    out = jax.block_until_ready(mod(x))
    assert out.shape == (N, num_features, wave_length // hop_size)
    assert out.dtype == jnp.float32

    ref = jax.block_until_ready(reference_forward(x, mod))
    assert jnp.allclose(out, ref, atol=2e-2, rtol=2e-2), \
        float(jnp.max(jnp.abs(out - ref)))

    print("KERNEL_OK")
</pallas_src>

<mosaic_0001>
module attributes {stable_mosaic.version = 11 : i64} {
  func.func @_embedding_kernel(%arg0: i32, %arg1: memref<16x256xbf16, #tpu.memory_space<vmem>>, %arg2: memref<256x128xbf16, #tpu.memory_space<vmem>>, %arg3: memref<1x128xf32, #tpu.memory_space<vmem>>, %arg4: memref<16x128xf32, #tpu.memory_space<vmem>>) attributes {dimension_semantics = [#tpu.dimension_semantics<parallel>], iteration_bounds = array<i64: 2>, scalar_prefetch = 0 : i64, scratch_operands = 0 : i64, tpu.core_type = #tpu.core_type<tc>, window_params = [{transform_indices = @transform_0, window_bounds = array<i64: 16, 256>}, {pipeline_mode = #tpu.pipeline_mode<synchronous>, transform_indices = @transform_1, window_bounds = array<i64: 256, 128>}, {pipeline_mode = #tpu.pipeline_mode<synchronous>, transform_indices = @transform_2, window_bounds = array<i64: 1, 128>}, {transform_indices = @transform_3, window_bounds = array<i64: 16, 128>}]} {
    %c0 = arith.constant 0 : index
    %c0_0 = arith.constant 0 : index
    %0 = vector.load %arg1[%c0, %c0_0] : memref<16x256xbf16, #tpu.memory_space<vmem>>, vector<16x256xbf16>
    %c0_1 = arith.constant 0 : index
    %c0_2 = arith.constant 0 : index
    %1 = vector.load %arg2[%c0_1, %c0_2] : memref<256x128xbf16, #tpu.memory_space<vmem>>, vector<256x128xbf16>
    %cst = arith.constant dense<0.000000e+00> : vector<16x128xf32>
    %2 = tpu.matmul %0, %1, %cst {dimension_numbers = #tpu.dot_dimension_numbers<[1], [0], [0], [1], [0, 0, 1, 1], [], []>} : vector<16x256xbf16>, vector<256x128xbf16>, vector<16x128xf32> -> vector<16x128xf32>
    %c0_3 = arith.constant 0 : index
    %c0_4 = arith.constant 0 : index
    %3 = vector.load %arg3[%c0_3, %c0_4] : memref<1x128xf32, #tpu.memory_space<vmem>>, vector<1x128xf32>
    %4 = vector.broadcast %3 : vector<1x128xf32> to vector<16x128xf32>
    %5 = arith.addf %2, %4 : vector<16x128xf32>
    %c0_5 = arith.constant 0 : index
    %c0_6 = arith.constant 0 : index
    %6 = vector.load %arg4[%c0_5, %c0_6] : memref<16x128xf32, #tpu.memory_space<vmem>>, vector<16x128xf32>
    tpu.vector_store %arg4[%c0_5, %c0_6], %5 {strides = array<i32>} : memref<16x128xf32, #tpu.memory_space<vmem>>, vector<16x128xf32>,
    return
  }
  func.func @transform_0(%arg0: i32) -> (i32, i32) {
    %c0_i32 = arith.constant 0 : i32
    %c0_i32_0 = arith.constant 0 : i32
    return %arg0, %c0_i32 : i32, i32
  }
  func.func @transform_1(%arg0: i32) -> (i32, i32) {
    %c0_i32 = arith.constant 0 : i32
    %c0_i32_0 = arith.constant 0 : i32
    %c0_i32_1 = arith.constant 0 : i32
    return %c0_i32, %c0_i32_0 : i32, i32
  }
  func.func @transform_2(%arg0: i32) -> (i32, i32) {
    %c0_i32 = arith.constant 0 : i32
    %c0_i32_0 = arith.constant 0 : i32
    %c0_i32_1 = arith.constant 0 : i32
    return %c0_i32, %c0_i32_0 : i32, i32
  }
  func.func @transform_3(%arg0: i32) -> (i32, i32) {
    %c0_i32 = arith.constant 0 : i32
    %c0_i32_0 = arith.constant 0 : i32
    return %arg0, %c0_i32 : i32, i32
  }
}

</mosaic_0001>

<bundles_post_ra>
// kernel: tpu_custom_call.1
= control target key start
LH: loop header
LB: loop body
LE: loop exit
PB: predicated region body
PF: predicated region fallthrough
CT: control target
= control target key end

     0   :  { %8 = vsyncpa [#allocation3], 0  ;;  %s970_s0 = inlined_call_operand.hbm [shape: bf16[32,256], index: 0, kind: input, shape index: {}]   ;;  %s971_s1 = inlined_call_operand.hbm [shape: bf16[256,128], index: 1, kind: input, shape index: {}]   ;;  %s972_s2 = inlined_call_operand.vmem [shape: f32[1,128], index: 2, kind: input, shape index: {}]   ;;  %s973_s3 = inlined_call_operand.hbm [shape: f32[32,128], index: 3, kind: output, shape index: {}]  }
   0x1   :  { %10 = vsyncpa [#allocation3 + $0x1], 0 }
   0x2   :  { %11 = vsyncpa [#allocation6], 0 }
   0x3   :  { %12 = vsyncpa [#allocation4], 0 }
   0x4   :  { %14 = vsyncpa [#allocation4 + $0x1], 0  ;;  %s817_s12 = smov 0   ;;  %s819_s13 = smov 0  }
   0x5   :  { %s821_s14 = smov 0   ;;  %s823_s15 = smov 0  }
   0x6 LB: > { %s838_s16 = sadd.s32 4294967295, %s788_s15   ;;  %s484_s17 = sadd.s32 4294967294, %s788_s15   ;;  %s788_s15 = sphi %s823_s15, %s983_s15   ;;  %s784_s14 = sphi %s821_s14, %s982_s14   ;;  %s780_s13 = sphi %s819_s13, %s981_s13   ;;  %s776_s12 = sphi %s817_s12, %s980_s12  }
   0x7   : > { %p40_p0 = scmp.ne.s32.totalorder %s780_s13, %s776_s12  ;;  %p41_p1 = scmp.eq.s32.totalorder %s838_s16, 0 }
   0x8   : > { %p106_p2 = scmp.eq.s32.totalorder %s838_s16, 1  ;;  %p112_p3 = scmp.eq.s32.totalorder %s484_s17, 1 }
   0x9   : > { %p847_p4 = por %p41_p1, %p40_p0  ;;  %p485_p5 = scmp.ge.s32.totalorder %s788_s15, 1 }
   0xa   : > { %p852_p6 = por %p112_p3, %p40_p0  ;;  %p119_p7 = scmp.lt.s32.totalorder %s788_s15, 3 }
   0xb   : > { %s130_s22 = sshll.u32 %s971_s1, 4  ;;  %s790_s24 = smov [#allocation5]   ;;  %s131_s22 = int_to_ptr.hbm [resolvable:$true] %s130_s22 }
   0xc   : > { %p860_p8 = pnand %p485_p5, %p119_p7  ;;  %s132_s25 = sshll.u32 %s790_s24, 4  ;;  %s133_s25 = int_to_ptr.vmem [resolvable:$true] %s132_s25 }
   0xd   : > { %s870_s26 = sadd.s32 1, %s788_s15   ;;  %s791_s27 = smov 64  }
   0xe   : > { %p602_p9 = pneg %p860_p8  ;;  %s792_s28 = smov 4  }
   0xf   : > { %s24_s29 = ssub.s32 %s788_s15, %s870_s26  ;;  %s27_s30 = sadd.s32 1, %s784_s14 }
  0x10   : > { %p603_p10 = pnand %p602_p9, %p41_p1  ;;  %p25_p12 = scmp.eq.s32.totalorder %s24_s29, 0 }
  0x11   : > { %p34_p13 = scmp.ne.s32.totalorder %s784_s14, %s780_s13  ;;  %p35_p0 = scmp.eq.s32.totalorder %s788_s15, 0 }
  0x12   : > { %605 = dma.hbm_to_vmem [thread:$0]  (!%p603_p10), %s131_s22, 2048, %s133_s25, [#allocation6], %s791_s27, %s791_s27, %s792_s28  }
  0x13   : > { %p615_p3 = scmp.lt.s32.totalorder %s788_s15, 2  ;;  %p36_p5 = por %p35_p0, %p34_p13 }
  0x14   : > { %s880_s4 = scalar_select %p25_p12, %s784_s14, %s27_s30  }
  0x15   : > { %p884_p7 = por %p106_p2, %p34_p13  ;;  %s149_s6 = sand.u32 1, %s784_s14  }
  0x16   : > { %s574_s7 = sshll.u32 %s788_s15, 4  ;;  %s488_s8 = sshll.u32 %s149_s6, 4 }
  0x17   : > { %s159_s11 = scalar_lea.hbm %s970_s0, %s574_s7  ;;  %s153_s20 = scalar_lea.vmem [#allocation2], %s488_s8 }
  0x18   : > { %s160_s17 = sshll.u32 %s159_s11, 4  ;;  %s162_s21 = sshll.u32 %s153_s20, 4  ;;  %s161_s17 = int_to_ptr.hbm [resolvable:$true] %s160_s17  ;;  %s163_s21 = int_to_ptr.vmem [resolvable:$true] %s162_s21 }
  0x19   : > { %p895_p9 = pnand %p615_p3, %p36_p5  ;;  %s150_s24 = scalar_lea.sflag [#allocation3], %s149_s6 }
  0x1a   : > { %s688_s25 = sshra.s32 %s161_s17, 4  ;;  %s695_s30 = scalar_lea.hbm %s970_s0, 32  ;;  %s689_s25 = int_to_ptr.hbm [resolvable:$true] %s688_s25 }
  0x1b   : > { %s690_s27 = scalar_lea.hbm %s689_s25, 16  ;;  %p692_p10 = pneg %p895_p9 }
  0x1c   : > { %p691_p2 = scmp.ne.s32.totalorder %s689_s25, %s690_s27  ;;  %p696_p0 = scmp.lt.s32.totalorder %s689_s25, %s970_s0 }
  0x1d   : > { %p697_p3 = scmp.lt.s32.totalorder %s695_s30, %s690_s27 }
  0x1e   : > { %p693_p12 = pnand %p692_p10, %p691_p2 }
  0x1f   : > { %p698_p5 = por %p697_p3, %p696_p0 }
  0x20   : > { %p694_p13 = pneg %p693_p12 }
  0x22   : > { %p699_p11 = pnand %p698_p5, %p694_p13 }
  0x24   : > { %702 = shalt.err (!%p699_p11)
}
  0x25   : > { %s793_s6 = smov 128   ;;  %s794_s9 = smov 8  }
  0x26   : > { %609 = dma.hbm_to_vmem [thread:$0]  (!%p895_p9), %s161_s17, 256, %s163_s21, %s150_s24, %s793_s6, %s793_s6, %s794_s9  }
  0x27   : > { %174 = sbr.rel (%p860_p8) target bundleno = 221 (0xdd), region = 32  ;;  %s912_s10 = sand.u32 (!%p860_p8), 1, %s780_s13  }
  0x28   : > { %s493_s11 = sshll.u32 (!%p860_p8), %s912_s10, 4  ;;  %s177_s20 = scalar_lea.sflag (!%p860_p8), [#allocation3], %s912_s10 }
  0x29   : > { %s918_s25 = scalar_lea.vmem (!%p860_p8), [#allocation2], %s493_s11 }
  0x2c   : > { %763 = dma.done.wait (%p847_p4), %s177_s20, 256  }
  0x2d   : > { %765 = vsyncadd (%p847_p4), %s177_s20, 4294967040 }
  0x2e   : > { %767 = dma.done.wait (%p41_p1), [#allocation6], 2048  }
  0x2f   : > { %769 = vsyncadd (%p41_p1), [#allocation6], 4294965248  ;;  %v584_v0 = vld [vmem:[#allocation5 + $0x38] sm:$0xff]  ;;  %v583_v2 = vld [vmem:[#allocation5 + $0x30] sm:$0xff]  ;;  %s593_s17 = sshll.u32 %s838_s16, 4  ;;  %s208_s27 = scalar_lea.vmem [#allocation7], %s493_s11 }
  0x30   : > { %v592_v1 = vld [vmem:[#allocation5 + $0x78] sm:$0xff]  ;;  %355 = vmatpush.bf16.msra.mxu0 %v584_v0  ;;  %v591_v3 = vld [vmem:[#allocation5 + $0x70] sm:$0xff]  ;;  %v582_v4 = vld [vmem:[#allocation5 + $0x28] sm:$0xff]  ;;  %s397_s24 = scalar_lea.hbm %s973_s3, %s593_s17  ;;  %s398_s28 = sshll.u32 %s208_s27, 4  ;;  %s399_s28 = int_to_ptr.vmem [resolvable:$true] %s398_s28 }
  0x31   : > { %369 = vmatpush.bf16.msra.mxu1 %v592_v1  ;;  %v590_v5 = vld [vmem:[#allocation5 + $0x68] sm:$0xff]  ;;  %v581_v6 = vld [vmem:[#allocation5 + $0x20] sm:$0xff]  ;;  %v580_v8 = vld [vmem:[#allocation5 + $0x18] sm:$0xff]  ;;  %s400_s29 = sshll.u32 %s397_s24, 4  ;;  %s386_s30 = scalar_lea.sflag [#allocation4], %s912_s10  ;;  %s401_s29 = int_to_ptr.hbm [resolvable:$true] %s400_s29 }
  0x32   : > { %v589_v7 = vld [vmem:[#allocation5 + $0x60] sm:$0xff]  ;;  %v588_v9 = vld [vmem:[#allocation5 + $0x58] sm:$0xff]  ;;  %v579_v10 = vld [vmem:[#allocation5 + $0x10] sm:$0xff]  ;;  %s732_s16 = sshra.s32 %s401_s29, 4  ;;  %s738_s9 = scalar_lea.hbm %s973_s3, 32  ;;  %s733_s16 = int_to_ptr.hbm [resolvable:$true] %s732_s16 }
  0x33   : > { %v587_v11 = vld [vmem:[#allocation5 + $0x50] sm:$0xff]  ;;  %v578_v12 = vld [vmem:[#allocation5 + $0x8] sm:$0xff]  ;;  %v577_v14 = vld [vmem:[#allocation5] sm:$0xff]  ;;  %s734_s7 = scalar_lea.hbm %s733_s16, 16  ;;  %p739_p11 = scmp.lt.s32.totalorder %s733_s16, %s973_s3 }
  0x34   : > { %356 = vmatpush.bf16.msra.mxu0 %v583_v2  ;;  %v586_v13 = vld [vmem:[#allocation5 + $0x48] sm:$0xff]  ;;  %v585_v15 = vld [vmem:[#allocation5 + $0x40] sm:$0xff]  ;;  %p735_p1 = scmp.ne.s32.totalorder %s733_s16, %s734_s7  ;;  %p740_p9 = scmp.lt.s32.totalorder %s738_s9, %s734_s7 }
  0x35   : > { %370 = vmatpush.bf16.msra.mxu1 %v591_v3  ;;  %v498_v16 = vld [vmem:[%s918_s25] sm:$0xf]  ;;  %v576_v17 = vld [vmem:[%s918_s25 + $0x4] sm:$0xf0]  ;;  %v575_v18 = vld [vmem:[%s918_s25 + $0x4] sm:$0xf] }
  0x36   : > { %v500_v19 = vld [vmem:[%s918_s25 + $0x8] sm:$0xf0]  ;;  %v499_v20 = vor.u32 %v576_v17, %v498_v16  ;;  %v657_v22 = vld [vmem:[%s972_s2] ss:$0 sm:$0xff]  ;;  %p736_p4 = pnand %p735_p1, %p884_p7  ;;  %p741_p2 = por %p740_p9, %p739_p11 }
  0x37   : > { %v503_v21 = vor.u32 %v575_v18, %v500_v19 }
  0x38   : > { %357 = vmatpush.bf16.msra.mxu0 %v582_v4  ;;  %p737_p8 = pneg %p736_p4 }
  0x39   : > { %371 = vmatpush.bf16.msra.mxu1 %v590_v5 }
  0x3a   : > { %p742_p10 = pnand %p741_p2, %p737_p8 }
  0x3c   : > { %358 = vmatpush.bf16.msra.mxu0 %v581_v6 }
  0x3d   : > { %372 = vmatpush.bf16.msra.mxu1 %v589_v7 }
  0x40   : > { %359 = vmatpush.bf16.msra.mxu0 %v580_v8 }
  0x41   : > { %373 = vmatpush.bf16.msra.mxu1 %v588_v9 }
  0x44   : > { %360 = vmatpush.bf16.msra.mxu0 %v579_v10 }
  0x45   : > { %374 = vmatpush.bf16.msra.mxu1 %v587_v11 }
  0x48   : > { %361 = vmatpush.bf16.msra.mxu0 %v578_v12 }
  0x49   : > { %375 = vmatpush.bf16.msra.mxu1 %v586_v13 }
  0x4c   : > { %362 = vmatpush.bf16.msra.mxu0 %v577_v14 }
  0x4d   : > { %376 = vmatpush.bf16.msra.mxu1 %v585_v15 }
  0x4f   : > { %363 = vmatmul.bf16.vlgmr.msra.gmra.mxu0 %v499_v20 }
  0x50   : > { %377 = vmatmul.bf16.vlgmr.msra.gmra.mxu1 %v503_v21 }
  0xcc   : > { %v364_v23 = vpop.f32.mrf.mxu0 }
  0xcd   : > { %v378_v24 = vpop.f32.mrf.mxu1  ;;  %v365_v25 = vadd.f32 %v657_v22, %v364_v23 }
  0xcf   : > { %v379_v26 = vadd.f32 %v378_v24, %v365_v25 }
  0xd1   : > { %383 = vst [vmem:[%s208_s27] sm:$0xff] %v379_v26 }
  0xd4   : > { %v366_v27 = vpop.f32.mrf.mxu0 }
  0xd5   : > { %v367_v28 = vadd.f32 %v657_v22, %v366_v27  ;;  %v380_v29 = vpop.f32.mrf.mxu1 }
  0xd7   : > { %v381_v30 = vadd.f32 %v380_v29, %v367_v28 }
  0xd9   : > { %384 = vst [vmem:[%s208_s27 + $0x8] sm:$0xff] %v381_v30 }
  0xda   : > { %745 = shalt.err (!%p742_p10)
}
  0xdb   : > { %s795_s10 = smov 128   ;;  %s796_s25 = smov 8  }
  0xdc   : > { %600 = dma.vmem_to_hbm [thread:$0]  (%p884_p7), %s399_s28, 256, %s401_s29, %s386_s30, %s795_s10, %s795_s10, %s796_s25  }
  0xdd PF: > { %s415_s18 = sand.u32 1, %s776_s12   ;;  %p979_p12 = scmp.ge.s32.totalorder %s788_s15, 2 }
  0xde   : > { %s416_s23 = scalar_lea.sflag [#allocation4], %s415_s18 }
  0xdf   : > { %p611_p13 = pnand %p979_p12, %p852_p6 }
  0xe1   : > { %p612_p0 = pneg %p611_p13 }
  0xe3   : > { %771 = dma.done.wait (%p612_p0), %s416_s23, 256  }
  0xe4   : > { %773 = vsyncadd (%p612_p0), %s416_s23, 4294967040  ;;  %p17_p3 = scmp.ge.s32.totalorder %s870_s26, 4   ;;  %s980_s12 = smov %s780_s13 }
  0xe5   : > { %s981_s13 = smov %s784_s14  ;;  %s982_s14 = smov %s880_s4 }
  0xe6   : > { %s983_s15 = smov %s870_s26  ;;  %19 = sbr.rel (!%p17_p3) target bundleno = 6 (0x6), region = 81 }
  0xeb   :  { %422 = vsyncpa [#allocation3], 1 }
  0xec   :  { %424 = vsyncpa [#allocation3 + $0x1], 1 }
  0xed   :  { %425 = vsyncpa [#allocation6], 1 }
  0xee   :  { %426 = vsyncpa [#allocation4], 1 }
  0xef   :  { %428 = vsyncpa [#allocation4 + $0x1], 1 }

</bundles_post_ra>
